<compile_context>
chip_gen: v6e
topology: v6e:2x2x1
jax: 0.10.0
libtpu: 0.0.40
codegen_flags: <defaults>
</compile_context>

<pallas_src>
import numpy as np

import jax
import jax.numpy as jnp
from jax import lax
from jax.experimental import pallas as pl
from jax.experimental.pallas import tpu as pltpu


# ---------------------------------------------------------------------------
# Kernel
# ---------------------------------------------------------------------------
def _fused_conv_block_kernel(x_ref, wb1_ref, b1_ref, wb2_ref, b2_ref, o_ref,
                             xpad_ref, ypad_ref):
    """One grid step = `nb` images, both conv+BN+ReLU layers fused.

    x_ref:    (nb, H, W*Cin)        lane-dense input slab
    wb1_ref:  (3, W*Cin, W*C1)      layer-1 banded weights (BN folded),
                                    one matrix per kernel row ky
    b1_ref:   (1, W*C1)             layer-1 folded bias, tiled over W
    wb2_ref:  (3, W*C1, W*C2)       layer-2 banded weights
    b2_ref:   (1, W*C2)             layer-2 folded bias, tiled over W
    o_ref:    (nb, H, W*C2)         lane-dense output slab
    xpad_ref: (nb, H+2, W*Cin)      VMEM scratch, vertically padded input
    ypad_ref: (nb, H+2, W*C1)       VMEM scratch, vertically padded layer-1 out
    """
    nb, hp2, wcin = xpad_ref.shape
    H = hp2 - 2
    wc1 = ypad_ref.shape[2]
    wc2 = o_ref.shape[2]

    # Only the two vertical border rows ever need zeros (horizontal padding is
    # folded into the banded weight matrices).  Re-zero them every step: it is
    # four full-width row stores, and it stays correct when the parallel grid
    # axis is split across TensorCores (each core owns its own scratch, so a
    # pl.when(program_id == 0) one-shot init would miss the second core).
    xpad_ref[:, 0:1, :] = jnp.zeros((nb, 1, wcin), jnp.float32)
    xpad_ref[:, H + 1:H + 2, :] = jnp.zeros((nb, 1, wcin), jnp.float32)
    ypad_ref[:, 0:1, :] = jnp.zeros((nb, 1, wc1), jnp.float32)
    ypad_ref[:, H + 1:H + 2, :] = jnp.zeros((nb, 1, wc1), jnp.float32)

    # ---- layer 1: conv3x3 (+ folded BN) + ReLU -----------------------------
    xpad_ref[:, 1:H + 1, :] = x_ref[...]          # wide, lane-offset-0 stores
    acc1 = jnp.zeros((nb * H, wc1), jnp.float32)
    for ky in range(3):                           # 3 accumulated banded dots
        lhs = xpad_ref[:, ky:ky + H, :].reshape(nb * H, wcin)
        acc1 = acc1 + jnp.dot(lhs, wb1_ref[ky],
                              preferred_element_type=jnp.float32)
    y1 = jnp.maximum(acc1 + b1_ref[...], 0.0)     # (nb*H, W*C1)

    # ---- layer 2: intermediate never leaves VMEM ---------------------------
    ypad_ref[:, 1:H + 1, :] = y1.reshape(nb, H, wc1)
    acc2 = jnp.zeros((nb * H, wc2), jnp.float32)
    for ky in range(3):
        lhs = ypad_ref[:, ky:ky + H, :].reshape(nb * H, wc1)
        acc2 = acc2 + jnp.dot(lhs, wb2_ref[ky],
                              preferred_element_type=jnp.float32)
    y2 = jnp.maximum(acc2 + b2_ref[...], 0.0)     # (nb*H, W*C2)

    # Lane-dense output: already in (rows, W*C2) layout — no relayout needed.
    o_ref[...] = y2.reshape(nb, H, wc2).astype(o_ref.dtype)


# ---------------------------------------------------------------------------
# Wrapper-side weight preparation
# ---------------------------------------------------------------------------
def _fold_bn(w_oihw, bias, gamma, beta, mean, var, eps):
    """Fold inference BN into the conv: relu(x*w' + b') == relu(BN(conv(x)))."""
    scale = gamma / jnp.sqrt(var + eps)                       # (Cout,)
    w = (w_oihw * scale[:, None, None, None]).astype(jnp.float32)
    b = ((bias - mean) * scale + beta).astype(jnp.float32)
    return w, b


def _banded_weights(w_oihw, w_img):
    """(Cout, Cin, 3, 3) -> (3, W*Cin, W*Cout) block-banded matrices.

    banded[ky, ws*Cin + ci, w*Cout + co] = w[co, ci, ky, ws - w + 1]
    for |ws - w| <= 1 and 0 <= ws < W; out-of-range kx terms are simply left
    zero, which implements the horizontal zero-padding of the convolution.
    """
    cout, cin = int(w_oihw.shape[0]), int(w_oihw.shape[1])
    w_t = jnp.transpose(w_oihw, (2, 3, 1, 0)).astype(jnp.float32)  # (ky,kx,ci,co)

    ky, kx, ci, w, co = np.meshgrid(
        np.arange(3), np.arange(3), np.arange(cin), np.arange(w_img),
        np.arange(cout), indexing="ij")
    src_w = w + kx - 1
    valid = (src_w >= 0) & (src_w < w_img)
    rows = np.where(valid, src_w, 0) * cin + ci
    cols = w * cout + co

    vals = jnp.broadcast_to(w_t[:, :, :, None, :], (3, 3, cin, w_img, cout))
    vals = jnp.where(jnp.asarray(valid), vals, 0.0)

    banded = jnp.zeros((3, w_img * cin, w_img * cout), jnp.float32)
    banded = banded.at[ky.reshape(-1), rows.reshape(-1),
                       cols.reshape(-1)].add(vals.reshape(-1))
    return banded


def _pick_images_per_block(n, h):
    """Fatten M (= nb*H rows per dot) to amortize the ~0.35us per-step cost,
    but keep >= 2 grid steps when N >= 2 so both TensorCores get work."""
    best = 1
    for nb in range(1, n + 1):
        if n % nb == 0 and nb * h <= 256 and (n // nb) >= min(2, n):
            best = nb
    return best


# ---------------------------------------------------------------------------
# Public entry points
# ---------------------------------------------------------------------------
def conv_block_3_nhwc(x_nhwc, params, eps=1e-5):
    """x: (N, H, W, Cin) float32 -> (N, H, W, C2). Fused two-layer block."""
    N, H, W, Cin = x_nhwc.shape
    C1 = params["w1"].shape[0]
    C2 = params["w2"].shape[0]

    w1s, b1 = _fold_bn(params["w1"], params["b1"], params["gamma1"],
                       params["beta1"], params["mean1"], params["var1"], eps)
    w2s, b2 = _fold_bn(params["w2"], params["b2"], params["gamma2"],
                       params["beta2"], params["mean2"], params["var2"], eps)

    wb1 = _banded_weights(w1s, W)                       # (3, W*Cin, W*C1)
    wb2 = _banded_weights(w2s, W)                       # (3, W*C1,  W*C2)
    b1t = jnp.tile(b1, (W,)).reshape(1, W * C1)
    b2t = jnp.tile(b2, (W,)).reshape(1, W * C2)

    x2d = x_nhwc.reshape(N, H, W * Cin)                 # free, lane-dense view

    nb = _pick_images_per_block(N, H)
    grid = (N // nb,)

    cost = pl.CostEstimate(
        flops=2 * N * H * 3 * ((W * Cin) * (W * C1) + (W * C1) * (W * C2)),
        transcendentals=0,
        bytes_accessed=4 * (x2d.size + wb1.size + wb2.size + b1t.size
                            + b2t.size + N * H * W * C2),
    )

    out2d = pl.pallas_call(
        _fused_conv_block_kernel,
        out_shape=jax.ShapeDtypeStruct((N, H, W * C2), x_nhwc.dtype),
        grid_spec=pltpu.PrefetchScalarGridSpec(
            num_scalar_prefetch=0,
            grid=grid,
            in_specs=[
                pl.BlockSpec((nb, H, W * Cin), lambda n: (n, 0, 0)),
                pl.BlockSpec((3, W * Cin, W * C1), lambda n: (0, 0, 0)),
                pl.BlockSpec((1, W * C1), lambda n: (0, 0)),
                pl.BlockSpec((3, W * C1, W * C2), lambda n: (0, 0, 0)),
                pl.BlockSpec((1, W * C2), lambda n: (0, 0)),
            ],
            out_specs=pl.BlockSpec((nb, H, W * C2), lambda n: (n, 0, 0)),
            scratch_shapes=[
                pltpu.VMEM((nb, H + 2, W * Cin), jnp.float32),  # padded input
                pltpu.VMEM((nb, H + 2, W * C1), jnp.float32),   # padded y1
            ],
        ),
        compiler_params=pltpu.CompilerParams(
            dimension_semantics=("parallel",),
            vmem_limit_bytes=64 * 1024 * 1024),
        cost_estimate=cost,
    )(x2d, wb1, b1t, wb2, b2t)

    return out2d.reshape(N, H, W, C2)                   # free view back to NHWC


def conv_block_3_forward(x_nchw, params):
    """PyTorch-compatible entry point: x is NCHW, returns NCHW.

    If the surrounding model can stay NHWC, call conv_block_3_nhwc directly
    and skip these two boundary transposes (each is a full HBM pass).
    """
    x = jnp.transpose(x_nchw, (0, 2, 3, 1))  # NCHW -> NHWC
    y = conv_block_3_nhwc(x, params)
    return jnp.transpose(y, (0, 3, 1, 2))    # NHWC -> NCHW


# ---------------------------------------------------------------------------
# Pure-JAX reference (same math, unfused) for a correctness check.
# ---------------------------------------------------------------------------
def _ref_conv_bn_relu(x_nhwc, w_oihw, bias, gamma, beta, mean, var, eps=1e-5):
    w_hwio = jnp.transpose(w_oihw, (2, 3, 1, 0))
    y = lax.conv_general_dilated(
        x_nhwc, w_hwio, window_strides=(1, 1), padding=((1, 1), (1, 1)),
        dimension_numbers=("NHWC", "HWIO", "NHWC"))
    y = y + bias.reshape(1, 1, 1, -1)
    scale = gamma / jnp.sqrt(var + eps)
    shift = beta - mean * scale
    y = y * scale.reshape(1, 1, 1, -1) + shift.reshape(1, 1, 1, -1)
    return jnp.maximum(y, 0.0)


def _ref_forward(x_nchw, p):
    x = jnp.transpose(x_nchw, (0, 2, 3, 1))
    y = _ref_conv_bn_relu(x, p["w1"], p["b1"], p["gamma1"], p["beta1"],
                          p["mean1"], p["var1"])
    y = _ref_conv_bn_relu(y, p["w2"], p["b2"], p["gamma2"], p["beta2"],
                          p["mean2"], p["var2"])
    return jnp.transpose(y, (0, 3, 1, 2))


def init_params(key, ch_in, ch_out):
    k = jax.random.split(key, 12)
    nrm = lambda i, shape: jax.random.normal(k[i], shape, jnp.float32)
    return {
        "w1": 0.1 * nrm(0, (ch_out, ch_in, 3, 3)),
        "b1": 0.05 * nrm(1, (ch_out,)),
        "w2": 0.1 * nrm(2, (ch_out, ch_out, 3, 3)),
        "b2": 0.05 * nrm(3, (ch_out,)),
        # Non-trivial BN running stats so the BN-folding path is exercised.
        "gamma1": 1.0 + 0.1 * nrm(4, (ch_out,)),
        "beta1": 0.1 * nrm(5, (ch_out,)),
        "mean1": 0.1 * nrm(6, (ch_out,)),
        "var1": jax.random.uniform(k[7], (ch_out,), jnp.float32, 0.5, 1.5),
        "gamma2": 1.0 + 0.1 * nrm(8, (ch_out,)),
        "beta2": 0.1 * nrm(9, (ch_out,)),
        "mean2": 0.1 * nrm(10, (ch_out,)),
        "var2": jax.random.uniform(k[11], (ch_out,), jnp.float32, 0.5, 1.5),
    }


if __name__ == "__main__":
    key = jax.random.PRNGKey(0)
    kx, kp = jax.random.split(key)

    N, C_IN, C_OUT, H, W = 2, 4, 8, 16, 16
    x = jax.random.normal(kx, (N, C_IN, H, W), dtype=jnp.float32)
    params = init_params(kp, C_IN, C_OUT)

    fwd = jax.jit(conv_block_3_forward)
    out = jax.block_until_ready(fwd(x, params))
    ref = jax.block_until_ready(_ref_forward(x, params))

    assert out.shape == (N, C_OUT, H, W)
    assert jnp.allclose(out, ref, atol=1e-4, rtol=1e-4), "mismatch vs reference"
    print("KERNEL_OK")
</pallas_src>

<mosaic_0001>
module attributes {stable_mosaic.version = 11 : i64} {
  func.func private @main(%arg0: i32) attributes {dimension_semantics = [#tpu.dimension_semantics<core_parallel>], iteration_bounds = array<i64: 2>, tpu.core_type = #tpu.core_type<sc_scalar_subcore>, window_params = []} {
    return
  }
}

module attributes {stable_mosaic.version = 11 : i64} {
  func.func private @main(%arg0: i32) attributes {dimension_semantics = [#tpu.dimension_semantics<core_parallel>], iteration_bounds = array<i64: 2>, tpu.core_type = #tpu.core_type<sc_scalar_subcore>, window_params = []} {
    return
  }
}

module attributes {stable_mosaic.version = 11 : i64} {
  func.func @_fused_conv_block_kernel(%arg0: i32, %arg1: memref<1x16x64xf32, #tpu.memory_space<vmem>>, %arg2: memref<3x64x128xf32, #tpu.memory_space<vmem>>, %arg3: memref<1x128xf32, #tpu.memory_space<vmem>>, %arg4: memref<3x128x128xf32, #tpu.memory_space<vmem>>, %arg5: memref<1x128xf32, #tpu.memory_space<vmem>>, %arg6: memref<1x16x128xf32, #tpu.memory_space<vmem>>, %arg7: memref<1x18x64xf32, #tpu.memory_space<vmem>>, %arg8: memref<1x18x128xf32, #tpu.memory_space<vmem>>) attributes {dimension_semantics = [#tpu.dimension_semantics<parallel>], iteration_bounds = array<i64: 2>, scalar_prefetch = 0 : i64, scratch_operands = 2 : i64, tpu.core_type = #tpu.core_type<tc>, window_params = [{transform_indices = @transform_0, window_bounds = array<i64: 1, 16, 64>}, {pipeline_mode = #tpu.pipeline_mode<synchronous>, transform_indices = @transform_1, window_bounds = array<i64: 3, 64, 128>}, {pipeline_mode = #tpu.pipeline_mode<synchronous>, transform_indices = @transform_2, window_bounds = array<i64: 1, 128>}, {pipeline_mode = #tpu.pipeline_mode<synchronous>, transform_indices = @transform_3, window_bounds = array<i64: 3, 128, 128>}, {pipeline_mode = #tpu.pipeline_mode<synchronous>, transform_indices = @transform_4, window_bounds = array<i64: 1, 128>}, {transform_indices = @transform_5, window_bounds = array<i64: 1, 16, 128>}]} {
    %cst = arith.constant 0.000000e+00 : f32
    %0 = vector.broadcast %cst : f32 to vector<1x1x64xf32>
    %c0 = arith.constant 0 : index
    %c0_0 = arith.constant 0 : index
    %c0_1 = arith.constant 0 : index
    %1 = vector.load %arg7[%c0, %c0_0, %c0_1] : memref<1x18x64xf32, #tpu.memory_space<vmem>>, vector<1x1x64xf32>
    tpu.vector_store %arg7[%c0, %c0_0, %c0_1], %0 {strides = array<i32>} : memref<1x18x64xf32, #tpu.memory_space<vmem>>, vector<1x1x64xf32>,
    %cst_2 = arith.constant 0.000000e+00 : f32
    %2 = vector.broadcast %cst_2 : f32 to vector<1x1x64xf32>
    %c0_3 = arith.constant 0 : index
    %c17 = arith.constant 17 : index
    %c0_4 = arith.constant 0 : index
    %3 = vector.load %arg7[%c0_3, %c17, %c0_4] : memref<1x18x64xf32, #tpu.memory_space<vmem>>, vector<1x1x64xf32>
    tpu.vector_store %arg7[%c0_3, %c17, %c0_4], %2 {strides = array<i32>} : memref<1x18x64xf32, #tpu.memory_space<vmem>>, vector<1x1x64xf32>,
    %cst_5 = arith.constant 0.000000e+00 : f32
    %4 = vector.broadcast %cst_5 : f32 to vector<1x1x128xf32>
    %c0_6 = arith.constant 0 : index
    %c0_7 = arith.constant 0 : index
    %c0_8 = arith.constant 0 : index
    %5 = vector.load %arg8[%c0_6, %c0_7, %c0_8] : memref<1x18x128xf32, #tpu.memory_space<vmem>>, vector<1x1x128xf32>
    tpu.vector_store %arg8[%c0_6, %c0_7, %c0_8], %4 {strides = array<i32>} : memref<1x18x128xf32, #tpu.memory_space<vmem>>, vector<1x1x128xf32>,
    %cst_9 = arith.constant 0.000000e+00 : f32
    %6 = vector.broadcast %cst_9 : f32 to vector<1x1x128xf32>
    %c0_10 = arith.constant 0 : index
    %c17_11 = arith.constant 17 : index
    %c0_12 = arith.constant 0 : index
    %7 = vector.load %arg8[%c0_10, %c17_11, %c0_12] : memref<1x18x128xf32, #tpu.memory_space<vmem>>, vector<1x1x128xf32>
    tpu.vector_store %arg8[%c0_10, %c17_11, %c0_12], %6 {strides = array<i32>} : memref<1x18x128xf32, #tpu.memory_space<vmem>>, vector<1x1x128xf32>,
    %c0_13 = arith.constant 0 : index
    %c0_14 = arith.constant 0 : index
    %c0_15 = arith.constant 0 : index
    %8 = vector.load %arg1[%c0_13, %c0_14, %c0_15] : memref<1x16x64xf32, #tpu.memory_space<vmem>>, vector<1x16x64xf32>
    %c0_16 = arith.constant 0 : index
    %c1 = arith.constant 1 : index
    %c0_17 = arith.constant 0 : index
    %9 = vector.load %arg7[%c0_16, %c1, %c0_17] : memref<1x18x64xf32, #tpu.memory_space<vmem>>, vector<1x16x64xf32>
    tpu.vector_store %arg7[%c0_16, %c1, %c0_17], %8 {strides = array<i32>} : memref<1x18x64xf32, #tpu.memory_space<vmem>>, vector<1x16x64xf32>,
    %cst_18 = arith.constant 0.000000e+00 : f32
    %10 = vector.broadcast %cst_18 : f32 to vector<16x128xf32>
    %c0_19 = arith.constant 0 : index
    %c0_20 = arith.constant 0 : index
    %c0_21 = arith.constant 0 : index
    %11 = vector.load %arg7[%c0_19, %c0_20, %c0_21] : memref<1x18x64xf32, #tpu.memory_space<vmem>>, vector<1x16x64xf32>
    %12 = vector.shape_cast %11 : vector<1x16x64xf32> to vector<16x64xf32>
    %c0_22 = arith.constant 0 : index
    %c0_23 = arith.constant 0 : index
    %c0_24 = arith.constant 0 : index
    %13 = vector.load %arg2[%c0_22, %c0_23, %c0_24] : memref<3x64x128xf32, #tpu.memory_space<vmem>>, vector<1x64x128xf32>
    %14 = vector.shape_cast %13 : vector<1x64x128xf32> to vector<64x128xf32>
    %cst_25 = arith.constant dense<0.000000e+00> : vector<16x128xf32>
    %15 = tpu.matmul %12, %14, %cst_25 {dimension_numbers = #tpu.dot_dimension_numbers<[1], [0], [0], [1], [0, 0, 1, 1], [], []>} : vector<16x64xf32>, vector<64x128xf32>, vector<16x128xf32> -> vector<16x128xf32>
    %16 = arith.addf %10, %15 : vector<16x128xf32>
    %c0_26 = arith.constant 0 : index
    %c1_27 = arith.constant 1 : index
    %c0_28 = arith.constant 0 : index
    %17 = vector.load %arg7[%c0_26, %c1_27, %c0_28] : memref<1x18x64xf32, #tpu.memory_space<vmem>>, vector<1x16x64xf32>
    %18 = vector.shape_cast %17 : vector<1x16x64xf32> to vector<16x64xf32>
    %c1_29 = arith.constant 1 : index
    %c0_30 = arith.constant 0 : index
    %c0_31 = arith.constant 0 : index
    %19 = vector.load %arg2[%c1_29, %c0_30, %c0_31] : memref<3x64x128xf32, #tpu.memory_space<vmem>>, vector<1x64x128xf32>
    %20 = vector.shape_cast %19 : vector<1x64x128xf32> to vector<64x128xf32>
    %cst_32 = arith.constant dense<0.000000e+00> : vector<16x128xf32>
    %21 = tpu.matmul %18, %20, %cst_32 {dimension_numbers = #tpu.dot_dimension_numbers<[1], [0], [0], [1], [0, 0, 1, 1], [], []>} : vector<16x64xf32>, vector<64x128xf32>, vector<16x128xf32> -> vector<16x128xf32>
    %22 = arith.addf %16, %21 : vector<16x128xf32>
    %c0_33 = arith.constant 0 : index
    %c2 = arith.constant 2 : index
    %c0_34 = arith.constant 0 : index
    %23 = vector.load %arg7[%c0_33, %c2, %c0_34] : memref<1x18x64xf32, #tpu.memory_space<vmem>>, vector<1x16x64xf32>
    %24 = vector.shape_cast %23 : vector<1x16x64xf32> to vector<16x64xf32>
    %c2_35 = arith.constant 2 : index
    %c0_36 = arith.constant 0 : index
    %c0_37 = arith.constant 0 : index
    %25 = vector.load %arg2[%c2_35, %c0_36, %c0_37] : memref<3x64x128xf32, #tpu.memory_space<vmem>>, vector<1x64x128xf32>
    %26 = vector.shape_cast %25 : vector<1x64x128xf32> to vector<64x128xf32>
    %cst_38 = arith.constant dense<0.000000e+00> : vector<16x128xf32>
    %27 = tpu.matmul %24, %26, %cst_38 {dimension_numbers = #tpu.dot_dimension_numbers<[1], [0], [0], [1], [0, 0, 1, 1], [], []>} : vector<16x64xf32>, vector<64x128xf32>, vector<16x128xf32> -> vector<16x128xf32>
    %28 = arith.addf %22, %27 : vector<16x128xf32>
    %c0_39 = arith.constant 0 : index
    %c0_40 = arith.constant 0 : index
    %29 = vector.load %arg3[%c0_39, %c0_40] : memref<1x128xf32, #tpu.memory_space<vmem>>, vector<1x128xf32>
    %30 = vector.broadcast %29 : vector<1x128xf32> to vector<16x128xf32>
    %31 = arith.addf %28, %30 : vector<16x128xf32>
    %cst_41 = arith.constant 0.000000e+00 : f32
    %32 = vector.broadcast %cst_41 : f32 to vector<16x128xf32>
    %33 = arith.maximumf %31, %32 : vector<16x128xf32>
    %34 = vector.shape_cast %33 : vector<16x128xf32> to vector<1x16x128xf32>
    %c0_42 = arith.constant 0 : index
    %c1_43 = arith.constant 1 : index
    %c0_44 = arith.constant 0 : index
    %35 = vector.load %arg8[%c0_42, %c1_43, %c0_44] : memref<1x18x128xf32, #tpu.memory_space<vmem>>, vector<1x16x128xf32>
    tpu.vector_store %arg8[%c0_42, %c1_43, %c0_44], %34 {strides = array<i32>} : memref<1x18x128xf32, #tpu.memory_space<vmem>>, vector<1x16x128xf32>,
    %cst_45 = arith.constant 0.000000e+00 : f32
    %36 = vector.broadcast %cst_45 : f32 to vector<16x128xf32>
    %c0_46 = arith.constant 0 : index
    %c0_47 = arith.constant 0 : index
    %c0_48 = arith.constant 0 : index
    %37 = vector.load %arg8[%c0_46, %c0_47, %c0_48] : memref<1x18x128xf32, #tpu.memory_space<vmem>>, vector<1x16x128xf32>
    %38 = vector.shape_cast %37 : vector<1x16x128xf32> to vector<16x128xf32>
    %c0_49 = arith.constant 0 : index
    %c0_50 = arith.constant 0 : index
    %c0_51 = arith.constant 0 : index
    %39 = vector.load %arg4[%c0_49, %c0_50, %c0_51] : memref<3x128x128xf32, #tpu.memory_space<vmem>>, vector<1x128x128xf32>
    %40 = vector.shape_cast %39 : vector<1x128x128xf32> to vector<128x128xf32>
    %cst_52 = arith.constant dense<0.000000e+00> : vector<16x128xf32>
    %41 = tpu.matmul %38, %40, %cst_52 {dimension_numbers = #tpu.dot_dimension_numbers<[1], [0], [0], [1], [0, 0, 1, 1], [], []>} : vector<16x128xf32>, vector<128x128xf32>, vector<16x128xf32> -> vector<16x128xf32>
    %42 = arith.addf %36, %41 : vector<16x128xf32>
    %c0_53 = arith.constant 0 : index
    %c1_54 = arith.constant 1 : index
    %c0_55 = arith.constant 0 : index
    %43 = vector.load %arg8[%c0_53, %c1_54, %c0_55] : memref<1x18x128xf32, #tpu.memory_space<vmem>>, vector<1x16x128xf32>
    %44 = vector.shape_cast %43 : vector<1x16x128xf32> to vector<16x128xf32>
    %c1_56 = arith.constant 1 : index
    %c0_57 = arith.constant 0 : index
    %c0_58 = arith.constant 0 : index
    %45 = vector.load %arg4[%c1_56, %c0_57, %c0_58] : memref<3x128x128xf32, #tpu.memory_space<vmem>>, vector<1x128x128xf32>
    %46 = vector.shape_cast %45 : vector<1x128x128xf32> to vector<128x128xf32>
    %cst_59 = arith.constant dense<0.000000e+00> : vector<16x128xf32>
    %47 = tpu.matmul %44, %46, %cst_59 {dimension_numbers = #tpu.dot_dimension_numbers<[1], [0], [0], [1], [0, 0, 1, 1], [], []>} : vector<16x128xf32>, vector<128x128xf32>, vector<16x128xf32> -> vector<16x128xf32>
    %48 = arith.addf %42, %47 : vector<16x128xf32>
    %c0_60 = arith.constant 0 : index
    %c2_61 = arith.constant 2 : index
    %c0_62 = arith.constant 0 : index
    %49 = vector.load %arg8[%c0_60, %c2_61, %c0_62] : memref<1x18x128xf32, #tpu.memory_space<vmem>>, vector<1x16x128xf32>
    %50 = vector.shape_cast %49 : vector<1x16x128xf32> to vector<16x128xf32>
    %c2_63 = arith.constant 2 : index
    %c0_64 = arith.constant 0 : index
    %c0_65 = arith.constant 0 : index
    %51 = vector.load %arg4[%c2_63, %c0_64, %c0_65] : memref<3x128x128xf32, #tpu.memory_space<vmem>>, vector<1x128x128xf32>
    %52 = vector.shape_cast %51 : vector<1x128x128xf32> to vector<128x128xf32>
    %cst_66 = arith.constant dense<0.000000e+00> : vector<16x128xf32>
    %53 = tpu.matmul %50, %52, %cst_66 {dimension_numbers = #tpu.dot_dimension_numbers<[1], [0], [0], [1], [0, 0, 1, 1], [], []>} : vector<16x128xf32>, vector<128x128xf32>, vector<16x128xf32> -> vector<16x128xf32>
    %54 = arith.addf %48, %53 : vector<16x128xf32>
    %c0_67 = arith.constant 0 : index
    %c0_68 = arith.constant 0 : index
    %55 = vector.load %arg5[%c0_67, %c0_68] : memref<1x128xf32, #tpu.memory_space<vmem>>, vector<1x128xf32>
    %56 = vector.broadcast %55 : vector<1x128xf32> to vector<16x128xf32>
    %57 = arith.addf %54, %56 : vector<16x128xf32>
    %cst_69 = arith.constant 0.000000e+00 : f32
    %58 = vector.broadcast %cst_69 : f32 to vector<16x128xf32>
    %59 = arith.maximumf %57, %58 : vector<16x128xf32>
    %60 = vector.shape_cast %59 : vector<16x128xf32> to vector<1x16x128xf32>
    %c0_70 = arith.constant 0 : index
    %c0_71 = arith.constant 0 : index
    %c0_72 = arith.constant 0 : index
    %61 = vector.load %arg6[%c0_70, %c0_71, %c0_72] : memref<1x16x128xf32, #tpu.memory_space<vmem>>, vector<1x16x128xf32>
    tpu.vector_store %arg6[%c0_70, %c0_71, %c0_72], %60 {strides = array<i32>} : memref<1x16x128xf32, #tpu.memory_space<vmem>>, vector<1x16x128xf32>,
    return
  }
  func.func @transform_0(%arg0: i32) -> (i32, i32, i32) {
    %c0_i32 = arith.constant 0 : i32
    %c0_i32_0 = arith.constant 0 : i32
    %c0_i32_1 = arith.constant 0 : i32
    return %arg0, %c0_i32, %c0_i32_0 : i32, i32, i32
  }
  func.func @transform_1(%arg0: i32) -> (i32, i32, i32) {
    %c0_i32 = arith.constant 0 : i32
    %c0_i32_0 = arith.constant 0 : i32
    %c0_i32_1 = arith.constant 0 : i32
    %c0_i32_2 = arith.constant 0 : i32
    return %c0_i32, %c0_i32_0, %c0_i32_1 : i32, i32, i32
  }
  func.func @transform_2(%arg0: i32) -> (i32, i32) {
    %c0_i32 = arith.constant 0 : i32
    %c0_i32_0 = arith.constant 0 : i32
    %c0_i32_1 = arith.constant 0 : i32
    return %c0_i32, %c0_i32_0 : i32, i32
  }
  func.func @transform_3(%arg0: i32) -> (i32, i32, i32) {
    %c0_i32 = arith.constant 0 : i32
    %c0_i32_0 = arith.constant 0 : i32
    %c0_i32_1 = arith.constant 0 : i32
    %c0_i32_2 = arith.constant 0 : i32
    return %c0_i32, %c0_i32_0, %c0_i32_1 : i32, i32, i32
  }
  func.func @transform_4(%arg0: i32) -> (i32, i32) {
    %c0_i32 = arith.constant 0 : i32
    %c0_i32_0 = arith.constant 0 : i32
    %c0_i32_1 = arith.constant 0 : i32
    return %c0_i32, %c0_i32_0 : i32, i32
  }
  func.func @transform_5(%arg0: i32) -> (i32, i32, i32) {
    %c0_i32 = arith.constant 0 : i32
    %c0_i32_0 = arith.constant 0 : i32
    %c0_i32_1 = arith.constant 0 : i32
    return %arg0, %c0_i32, %c0_i32_0 : i32, i32, i32
  }
}

</mosaic_0001>

<bundles_post_ra>
// kernel: tile.13
= control target key start
LH: loop header
LB: loop body
LE: loop exit
PB: predicated region body
PF: predicated region fallthrough
CT: control target
= control target key end

     0   :  { %s28_s0 = inlined_call_operand.vmem [shape: f32[8], index: 0, kind: input, shape index: {}]   ;;  %s29_s1 = inlined_call_operand.vmem [shape: f32[16,8], index: 1, kind: output, shape index: {}]  }
   0x1   :  { %v4_v0 = vld [vmem:[%s28_s0] ss:$0 sm:$0xff] }
   0x2   :  { %5 = vst [vmem:[%s29_s1] sm:$0xff] %v4_v0  ;;  %8 = vst [vmem:[%s29_s1 + $0x8] sm:$0xff] %v4_v0 }

// kernel: tile.14
= control target key start
LH: loop header
LB: loop body
LE: loop exit
PB: predicated region body
PF: predicated region fallthrough
CT: control target
= control target key end

     0   :  { %s133_s10 = smov 120   ;;  %s134_s11 = smov 104   ;;  %vm3_vm0 = vcmask 64512   ;;  %vm9_vm1 = vcmask 1048512   ;;  %vm15_vm2 = vcmask 982912   ;;  %vm21_vm3 = vcmask 917312   ;;  %s209_s0 = inlined_call_operand.vmem [shape: f32[16,8], index: 0, kind: input, shape index: {}]   ;;  %s210_s1 = inlined_call_operand.vmem [shape: f32[1,128], index: 1, kind: output, shape index: {}]  }
   0x1   :  { %v103_v0 = vld [vmem:[%s209_s0 + $0xf] sm:$0x1]   ;;  %v105_v1 = vld [vmem:[%s209_s0 + $0xd] sm:$0x1]   ;;  %v104_v2 = vld [vmem:[%s209_s0 + $0xe] sm:$0x1]  }
   0x2   :  { %7 = vrot.lane.b32.xlu0 %v103_v0, %s133_s10  ;;  %19 = vrot.lane.b32.xlu1 %v105_v1, %s134_s11  ;;  %v106_v3 = vld [vmem:[%s209_s0 + $0xc] sm:$0x1]   ;;  %s135_s16 = smov 112   ;;  %s136_s17 = smov 96   ;;  %v107_v4 = vld [vmem:[%s209_s0 + $0xb] sm:$0x1]  }
   0x3   :  { %v108_v5 = vld [vmem:[%s209_s0 + $0xa] sm:$0x1]   ;;  %v2_v6 = vld [vmem:[%s209_s0] sm:$0x1]   ;;  %s137_s24 = smov 88   ;;  %s138_s25 = smov 80  }
   0x4   :  { %4 = vst.msk [vmem:[#allocation0] sm:$0x1] %vm3_vm0, %v2_v6   ;;  %v109_v7 = vld [vmem:[%s209_s0 + $0x9] sm:$0x1]   ;;  %v110_v8 = vld [vmem:[%s209_s0 + $0x8] sm:$0x1]  }
   0x5   :  { %s139_s30 = smov 72   ;;  %s140_s2 = smov 64   ;;  %v111_v9 = vld [vmem:[%s209_s0 + $0x7] sm:$0x1]   ;;  %v112_v10 = vld [vmem:[%s209_s0 + $0x6] sm:$0x1]  }
   0x6   :  { %13 = vrot.lane.b32.xlu0 %v104_v2, %s135_s16  ;;  %25 = vrot.lane.b32.xlu1 %v106_v3, %s136_s17  ;;  %s141_s7 = smov 56   ;;  %s142_s8 = smov 48   ;;  %v113_v11 = vld [vmem:[%s209_s0 + $0x5] sm:$0x1]   ;;  %v114_v12 = vld [vmem:[%s209_s0 + $0x4] sm:$0x1]  }
   0x7   :  { %s143_s13 = smov 40   ;;  %s144_s14 = smov 32   ;;  %v115_v13 = vld [vmem:[%s209_s0 + $0x3] sm:$0x1]   ;;  %v116_v14 = vld [vmem:[%s209_s0 + $0x2] sm:$0x1]  }
   0x8   :  { %s145_s19 = smov 24   ;;  %s146_s20 = smov 16   ;;  %v117_v15 = vld [vmem:[%s209_s0 + $0x1] sm:$0x1]   ;;  %vm27_vm4 = vcmask 851712   ;;  %vm33_vm5 = vcmask 786112  }
   0x9   :  { %s147_s0 = smov 8   ;;  %vm39_vm6 = vcmask 720512   ;;  %vm45_vm7 = vcmask 654912   ;;  %vm51_vm8 = vcmask 589312   ;;  %vm57_vm9 = vcmask 523712  }
   0xa   :  { %31 = vrot.lane.b32.xlu0 %v107_v4, %s137_s24  ;;  %37 = vrot.lane.b32.xlu1 %v108_v5, %s138_s25  ;;  %vm63_vm10 = vcmask 458112   ;;  %vm69_vm11 = vcmask 392512   ;;  %vm75_vm12 = vcmask 326912   ;;  %vm81_vm13 = vcmask 261312  }
   0xb   :  { %vm87_vm14 = vcmask 195712   ;;  %vm93_vm15 = vcmask 130112  }
   0xe   :  { %43 = vrot.lane.b32.xlu0 %v109_v7, %s139_s30  ;;  %49 = vrot.lane.b32.xlu1 %v110_v8, %s140_s2 }
  0x12   :  { %55 = vrot.lane.b32.xlu0 %v111_v9, %s141_s7  ;;  %61 = vrot.lane.b32.xlu1 %v112_v10, %s142_s8 }
  0x16   :  { %67 = vrot.lane.b32.xlu0 %v113_v11, %s143_s13  ;;  %73 = vrot.lane.b32.xlu1 %v114_v12, %s144_s14 }
  0x1a   :  { %79 = vrot.lane.b32.xlu0 %v115_v13, %s145_s19  ;;  %85 = vrot.lane.b32.xlu1 %v116_v14, %s146_s20 }
  0x1e   :  { %91 = vrot.lane.b32.xlu0 %v117_v15, %s147_s0 }
  0x74   :  { %v8_v16 = vpop.permute.xlu0 %7   ;;  %v20_v17 = vpop.permute.xlu1 %19  }
  0x75   :  { %10 = vst.msk [vmem:[#allocation0] sm:$0x1] %vm9_vm1, %v8_v16  }
  0x78   :  { %v14_v18 = vpop.permute.xlu0 %13   ;;  %v26_v19 = vpop.permute.xlu1 %25  }
  0x79   :  { %16 = vst.msk [vmem:[#allocation0] sm:$0x1] %vm15_vm2, %v14_v18  }
  0x7a   :  { %22 = vst.msk [vmem:[#allocation0] sm:$0x1] %vm21_vm3, %v20_v17  }
  0x7b   :  { %28 = vst.msk [vmem:[#allocation0] sm:$0x1] %vm27_vm4, %v26_v19  }
  0x7c   :  { %v32_v20 = vpop.permute.xlu0 %31   ;;  %v38_v21 = vpop.permute.xlu1 %37  }
  0x7d   :  { %34 = vst.msk [vmem:[#allocation0] sm:$0x1] %vm33_vm5, %v32_v20  }
  0x7e   :  { %40 = vst.msk [vmem:[#allocation0] sm:$0x1] %vm39_vm6, %v38_v21  }
  0x80   :  { %v44_v22 = vpop.permute.xlu0 %43   ;;  %v50_v23 = vpop.permute.xlu1 %49  }
  0x81   :  { %46 = vst.msk [vmem:[#allocation0] sm:$0x1] %vm45_vm7, %v44_v22  }
  0x82   :  { %52 = vst.msk [vmem:[#allocation0] sm:$0x1] %vm51_vm8, %v50_v23  }
  0x84   :  { %v56_v24 = vpop.permute.xlu0 %55   ;;  %v62_v25 = vpop.permute.xlu1 %61  }
  0x85   :  { %58 = vst.msk [vmem:[#allocation0] sm:$0x1] %vm57_vm9, %v56_v24  }
  0x86   :  { %64 = vst.msk [vmem:[#allocation0] sm:$0x1] %vm63_vm10, %v62_v25  }
  0x88   :  { %v68_v26 = vpop.permute.xlu0 %67   ;;  %v74_v27 = vpop.permute.xlu1 %73  }
  0x89   :  { %70 = vst.msk [vmem:[#allocation0] sm:$0x1] %vm69_vm11, %v68_v26  }
  0x8a   :  { %76 = vst.msk [vmem:[#allocation0] sm:$0x1] %vm75_vm12, %v74_v27  }
  0x8c   :  { %v80_v28 = vpop.permute.xlu0 %79   ;;  %v86_v29 = vpop.permute.xlu1 %85  }
  0x8d   :  { %82 = vst.msk [vmem:[#allocation0] sm:$0x1] %vm81_vm13, %v80_v28  }
  0x8e   :  { %88 = vst.msk [vmem:[#allocation0] sm:$0x1] %vm87_vm14, %v86_v29  }
  0x90   :  { %v92_v30 = vpop.permute.xlu0 %91  }
  0x91   :  { %94 = vst.msk [vmem:[#allocation0] sm:$0x1] %vm93_vm15, %v92_v30  }
  0x98   :  { %v99_v31 = vld [vmem:[#allocation0] sm:$0x1] }
  0x99   :  { %102 = vst [vmem:[%s210_s1] sm:$0x1] %v99_v31 }

// kernel: conv_block_3_forward.1
= control target key start
LH: loop header
LB: loop body
LE: loop exit
PB: predicated region body
PF: predicated region fallthrough
CT: control target
= control target key end

     0   :  { %10 = vsyncpa [#allocation5], 0  ;;  %s1298_s18 = smov 0   ;;  %s1502_s0 = inlined_call_operand.vmem [shape: f32[2,16,64], index: 0, kind: input, shape index: {}]   ;;  %s1503_s1 = inlined_call_operand.hbm [shape: f32[3,64,128], index: 1, kind: input, shape index: {}]   ;;  %s1504_s2 = inlined_call_operand.vmem [shape: f32[1,128], index: 2, kind: input, shape index: {}]   ;;  %s1505_s3 = inlined_call_operand.vmem [shape: f32[3,128,128], index: 3, kind: input, shape index: {}]   ;;  %s1506_s4 = inlined_call_operand.vmem [shape: f32[1,128], index: 4, kind: input, shape index: {}]   ;;  %s1507_s5 = inlined_call_operand.vmem [shape: f32[2,16,128], index: 5, kind: output, shape index: {}]  }
   0x1 LB: > { %s1304_s19 = sadd.s32 4294967295, %s1262_s18   ;;  %p905_p0 = scmp.ge.s32.totalorder %s1262_s18, 1  ;;  %s1262_s18 = sphi %s1298_s18, %s16_s18  }
   0x2   : > { %p157_p1 = scmp.lt.s32.totalorder %s1262_s18, 3  ;;  %s1264_s20 = smov [#allocation4]  }
   0x3   : > { %s169_s21 = sshll.u32 %s1264_s20, 4  ;;  %p1212_p3 = scmp.eq.s32.totalorder %s1304_s19, 0  ;;  %s170_s21 = int_to_ptr.vmem [resolvable:$true] %s169_s21 }
   0x4   : > { %p1308_p2 = pnand %p905_p0, %p157_p1  ;;  %s1237_s23 = scalar_lea.vmem %s170_s21, 3072 }
   0x5   : > { %p1238_p7 = scmp.ne.s32.totalorder %s170_s21, %s1237_s23  ;;  %p1245_p10 = scmp.lt.s32.totalorder %s170_s21, %s170_s21 }
   0x6   : > { %p1208_p4 = pneg %p1308_p2  ;;  %p1246_p11 = scmp.lt.s32.totalorder %s1237_s23, %s1237_s23 }
   0x8   : > { %p1209_p5 = pnand %p1212_p3, %p1208_p4  ;;  %p1247_p12 = por %p1246_p11, %p1245_p10 }
   0xa   : > { %p1228_p6 = pneg %p1209_p5 }
   0xc   : > { %p1240_p8 = pnand %p1238_p7, %p1228_p6 }
   0xe   : > { %p1241_p9 = pneg %p1240_p8 }
  0x10   : > { %p1248_p13 = pnand %p1247_p12, %p1241_p9 }
  0x12   : > { %1251 = shalt.err (!%p1248_p13)
}
  0x13   : > { %s1265_s24 = smov 128   ;;  %s1266_s25 = smov 8  }
  0x14   : > { %1211 = dma.hbm_to_vmem [thread:$0]  (!%p1209_p5), %s1503_s1, 3072, %s170_s21, [#allocation5], %s1265_s24, %s1265_s24, %s1266_s25  }
  0x15   : > { %202 = sbr.rel (%p1308_p2) target bundleno = 499 (0x1f3), region = 40 }
  0x1a   : > { %1257 = dma.done.wait (%p1212_p3), [#allocation5], 3072  }
  0x1b   : > { %1259 = vsyncadd (%p1212_p3), [#allocation5], 4294964224  ;;  %p230_p0 = scmp.lt.s32.totalorder %s1304_s19, 1  ;;  %vm240_vm0 = vcmask 516096   ;;  %v1267_v0 = vmov 0.0   ;;  %v270_v1 = vld [vmem:[#allocation4 + $0x78] sm:$0xff] }
  0x1c   : > { %241 = vst.msk [vmem:[#allocation2] sm:$0x1] %vm240_vm0, %v1267_v0  ;;  %242 = vst.msk [vmem:[#allocation2 + $0x11] sm:$0x1] %vm240_vm0, %v1267_v0  ;;  %v259_v2 = vld [vmem:[#allocation4 + $0x38] sm:$0xff]  ;;  %v269_v3 = vld [vmem:[#allocation4 + $0x70] sm:$0xff]  ;;  %1042 = vmatprep.subr.mxu0 %v270_v1 }
  0x1d   : > { %243 = vst [vmem:[#allocation3] sm:$0x1] %v1267_v0  ;;  %244 = vst [vmem:[#allocation3 + $0x11] sm:$0x1] %v1267_v0  ;;  %s1510_s19 = smov (!%p230_p0, %s1304_s19), 1  ;;  %1061 = vmatprep.subr.mxu1 %v259_v2  ;;  %v258_v4 = vld [vmem:[#allocation4 + $0x30] sm:$0xff]  ;;  %1043 = vmatpush3.msra.mxu0 %v270_v1 }
  0x1e   : > { %s956_s28 = sshll.u32 %s1510_s19, 4  ;;  %1062 = vmatpush3.msra.mxu1 %v259_v2  ;;  %v268_v5 = vld [vmem:[#allocation4 + $0x68] sm:$0xff]  ;;  %1044 = vmatprep.subr.mxu0 %v269_v3  ;;  %vm247_vm1 = vcmask 523264   ;;  %v267_v7 = vld [vmem:[#allocation4 + $0x60] sm:$0xff]  ;;  %v266_v11 = vld [vmem:[#allocation4 + $0x58] sm:$0xff] }
  0x1f   : > { %v257_v6 = vld [vmem:[#allocation4 + $0x28] sm:$0xff]  ;;  %s234_s6 = scalar_lea.vmem %s1502_s0, %s956_s28  ;;  %1063 = vmatprep.subr.mxu1 %v258_v4  ;;  %1045 = vmatpush3.msra.mxu0 %v269_v3  ;;  %v256_v8 = vld [vmem:[#allocation4 + $0x20] sm:$0xff]  ;;  %v255_v12 = vld [vmem:[#allocation4 + $0x18] sm:$0xff]  ;;  %s239_s23 = scalar_lea.vmem %s1507_s5, %s956_s28 }
  0x20   : > { %1064 = vmatpush3.msra.mxu1 %v258_v4  ;;  %1046 = vmatprep.subr.mxu0 %v268_v5  ;;  %v245_v9 = vld [vmem:[%s234_s6] sm:$0xff]  ;;  %v246_v10 = vld [vmem:[%s234_s6 + $0x8] sm:$0xff]  ;;  %v264_v15 = vld [vmem:[#allocation4 + $0x48] sm:$0xff] }
  0x21   : > { %1065 = vmatprep.subr.mxu1 %v257_v6  ;;  %1047 = vmatpush3.msra.mxu0 %v268_v5  ;;  %248 = vst.msk [vmem:[#allocation2 + $0x1] sm:$0xff] %vm247_vm1, %v245_v9  ;;  %249 = vst.msk [vmem:[#allocation2 + $0x9] sm:$0xff] %vm247_vm1, %v246_v10  ;;  %v265_v13 = vld [vmem:[#allocation4 + $0x50] sm:$0xff]  ;;  %v253_v16 = vld [vmem:[#allocation4 + $0x8] sm:$0xff] }
  0x22   : > { %1066 = vmatpush3.msra.mxu1 %v257_v6  ;;  %1048 = vmatprep.subr.mxu0 %v267_v7  ;;  %v254_v14 = vld [vmem:[#allocation4 + $0x10] sm:$0xff]  ;;  %v263_v17 = vld [vmem:[#allocation4 + $0x40] sm:$0xff]  ;;  %v443_v23 = vld [vmem:[#allocation4 + $0xb8] sm:$0xff] }
  0x23   : > { %1067 = vmatprep.subr.mxu1 %v256_v8  ;;  %1049 = vmatpush3.msra.mxu0 %v267_v7  ;;  %v252_v18 = vld [vmem:[#allocation4] sm:$0xff]  ;;  %v442_v25 = vld [vmem:[#allocation4 + $0xb0] sm:$0xff]  ;;  %v441_v26 = vld [vmem:[#allocation4 + $0xa8] sm:$0xff] }
  0x24   : > { %1068 = vmatpush3.msra.mxu1 %v256_v8  ;;  %1050 = vmatprep.subr.mxu0 %v266_v11  ;;  %v440_v27 = vld [vmem:[#allocation4 + $0xa0] sm:$0xff]  ;;  %v439_v28 = vld [vmem:[#allocation4 + $0x98] sm:$0xff]  ;;  %v438_v29 = vld [vmem:[#allocation4 + $0x90] sm:$0xff] }
  0x25   : > { %1069 = vmatprep.subr.mxu1 %v255_v12  ;;  %1051 = vmatpush3.msra.mxu0 %v266_v11  ;;  %v437_v30 = vld [vmem:[#allocation4 + $0x88] sm:$0xff]  ;;  %v436_v31 = vld [vmem:[#allocation4 + $0x80] sm:$0xff]  ;;  %v934_v35 = vld [vmem:[%s1505_s3 + $0xe8] sm:$0xff] }
  0x26   : > { %1070 = vmatpush3.msra.mxu1 %v255_v12  ;;  %1052 = vmatprep.subr.mxu0 %v265_v13  ;;  %v936_v33 = vld [vmem:[%s1505_s3 + $0xf8] sm:$0xff]  ;;  %v935_v34 = vld [vmem:[%s1505_s3 + $0xf0] sm:$0xff]  ;;  %v933_v36 = vld [vmem:[%s1505_s3 + $0xe0] sm:$0xff] }
  0x27   : > { %1071 = vmatprep.subr.mxu1 %v254_v14  ;;  %1053 = vmatpush3.msra.mxu0 %v265_v13  ;;  %v932_v37 = vld [vmem:[%s1505_s3 + $0xd8] sm:$0xff]  ;;  %v556_v39 = vld [vmem:[%s1505_s3 + $0x70] sm:$0xff]  ;;  %v555_v40 = vld [vmem:[%s1505_s3 + $0x68] sm:$0xff] }
  0x28   : > { %1072 = vmatpush3.msra.mxu1 %v254_v14  ;;  %1054 = vmatprep.subr.mxu0 %v264_v15  ;;  %v260_v19 = vld [vmem:[#allocation2 + $0x1] sm:$0xff]  ;;  %v261_v21 = vld [vmem:[#allocation2 + $0x9] sm:$0xff]  ;;  %v557_v38 = vld [vmem:[%s1505_s3 + $0x78] sm:$0xff] }
  0x29   : > { %1073 = vmatprep.subr.mxu1 %v253_v16  ;;  %1055 = vmatpush3.msra.mxu0 %v264_v15  ;;  %v250_v20 = vld [vmem:[#allocation2] sm:$0xff]  ;;  %v251_v22 = vld [vmem:[#allocation2 + $0x8] sm:$0xff]  ;;  %v931_v41 = vld [vmem:[%s1505_s3 + $0xd0] sm:$0xff] }
  0x2a   : > { %1074 = vmatpush3.msra.mxu1 %v253_v16  ;;  %1056 = vmatprep.subr.mxu0 %v263_v17  ;;  %v433_v24 = vld [vmem:[#allocation2 + $0x2] sm:$0xff]  ;;  %v434_v32 = vld [vmem:[#allocation2 + $0xa] sm:$0xff]  ;;  %v553_v45 = vld [vmem:[%s1505_s3 + $0x58] sm:$0xff] }
  0x2b   : > { %1075 = vmatprep.subr.mxu1 %v252_v18  ;;  %1057 = vmatpush3.msra.mxu0 %v263_v17  ;;  %v930_v42 = vld [vmem:[%s1505_s3 + $0xc8] sm:$0xff]  ;;  %v554_v43 = vld [vmem:[%s1505_s3 + $0x60] sm:$0xff]  ;;  %v928_v46 = vld [vmem:[%s1505_s3 + $0xb8] sm:$0xff] }
  0x2c   : > { %1058 = vmatprep.mubr.msk.f32.mxu0 %vm247_vm1, %v260_v19  ;;  %1076 = vmatpush3.msra.mxu1 %v252_v18  ;;  %v929_v44 = vld [vmem:[%s1505_s3 + $0xc0] sm:$0xff]  ;;  %v552_v47 = vld [vmem:[%s1505_s3 + $0x50] sm:$0xff]  ;;  %v551_v49 = vld [vmem:[%s1505_s3 + $0x48] sm:$0xff] }
  0x2d   : > { %1077 = vmatprep.mubr.msk.f32.mxu1 %vm247_vm1, %v250_v20  ;;  %1059 = vmatmul.mubr.msk.f32.vlgmr.msra.gmra.mxu0 %vm247_vm1, %v261_v21  ;;  %v927_v48 = vld [vmem:[%s1505_s3 + $0xb0] sm:$0xff]  ;;  %v926_v50 = vld [vmem:[%s1505_s3 + $0xa8] sm:$0xff]  ;;  %v925_v51 = vld [vmem:[%s1505_s3 + $0xa0] sm:$0xff] }
  0x2e   : > { %1078 = vmatmul.mubr.msk.f32.vlgmr.msra.gmra.mxu1 %vm247_vm1, %v251_v22  ;;  %1080 = vmatprep.subr.mxu0 %v443_v23  ;;  %v550_v52 = vld [vmem:[%s1505_s3 + $0x40] sm:$0xff]  ;;  %v924_v53 = vld [vmem:[%s1505_s3 + $0x98] sm:$0xff]  ;;  %v923_v55 = vld [vmem:[%s1505_s3 + $0x90] sm:$0xff] }
  0x2f   : > { %1096 = vmatprep.mubr.msk.f32.mxu0 %vm247_vm1, %v433_v24  ;;  %1081 = vmatpush3.msra.mxu0 %v443_v23  ;;  %v549_v54 = vld [vmem:[%s1505_s3 + $0x38] sm:$0xff]  ;;  %v548_v56 = vld [vmem:[%s1505_s3 + $0x30] sm:$0xff]  ;;  %v922_v57 = vld [vmem:[%s1505_s3 + $0x88] sm:$0xff] }
  0x30   : > { %1082 = vmatprep.subr.mxu0 %v442_v25  ;;  %1099 = vmatprep.subr.mxu1 %v936_v33  ;;  %v547_v58 = vld [vmem:[%s1505_s3 + $0x28] sm:$0xff]  ;;  %v921_v59 = vld [vmem:[%s1505_s3 + $0x80] sm:$0xff]  ;;  %v952_v61 = vld [vmem:[%s1505_s3 + $0x178] sm:$0xff] }
  0x31   : > { %1083 = vmatpush3.msra.mxu0 %v442_v25  ;;  %1100 = vmatpush3.msra.mxu1 %v936_v33  ;;  %v546_v60 = vld [vmem:[%s1505_s3 + $0x20] sm:$0xff]  ;;  %v545_v62 = vld [vmem:[%s1505_s3 + $0x18] sm:$0xff]  ;;  %v544_v63 = vld [vmem:[%s1505_s3 + $0x10] sm:$0xff] }
  0x32   : > { %1084 = vmatprep.subr.mxu0 %v441_v26  ;;  %1101 = vmatprep.subr.mxu1 %v935_v34  ;;  %v543_v0 = vld [vmem:[%s1505_s3 + $0x8] sm:$0xff]  ;;  %v542_v1 = vld [vmem:[%s1505_s3] sm:$0xff]  ;;  %v951_v17 = vld [vmem:[%s1505_s3 + $0x170] sm:$0xff] }
  0x33   : > { %1085 = vmatpush3.msra.mxu0 %v441_v26  ;;  %1102 = vmatpush3.msra.mxu1 %v935_v34  ;;  %v920_v8 = vld [vmem:[%s1504_s2] ss:$0 sm:$0xff]  ;;  %v950_v18 = vld [vmem:[%s1505_s3 + $0x168] sm:$0xff]  ;;  %v948_v20 = vld [vmem:[%s1505_s3 + $0x158] sm:$0xff] }
  0x34   : > { %1086 = vmatprep.subr.mxu0 %v440_v27  ;;  %1103 = vmatprep.subr.mxu1 %v934_v35  ;;  %v949_v19 = vld [vmem:[%s1505_s3 + $0x160] sm:$0xff]  ;;  %v947_v24 = vld [vmem:[%s1505_s3 + $0x150] sm:$0xff]  ;;  %v946_v25 = vld [vmem:[%s1505_s3 + $0x148] sm:$0xff] }
  0x35   : > { %1087 = vmatpush3.msra.mxu0 %v440_v27  ;;  %1104 = vmatpush3.msra.mxu1 %v934_v35  ;;  %v945_v26 = vld [vmem:[%s1505_s3 + $0x140] sm:$0xff]  ;;  %v944_v27 = vld [vmem:[%s1505_s3 + $0x138] sm:$0xff]  ;;  %v938_v33 = vld [vmem:[%s1505_s3 + $0x108] sm:$0xff] }
  0x36   : > { %1088 = vmatprep.subr.mxu0 %v439_v28  ;;  %1105 = vmatprep.subr.mxu1 %v933_v36  ;;  %v937_v34 = vld [vmem:[%s1505_s3 + $0x100] sm:$0xff] }
  0x37   : > { %1089 = vmatpush3.msra.mxu0 %v439_v28  ;;  %1106 = vmatpush3.msra.mxu1 %v933_v36  ;;  %v943_v28 = vld [vmem:[%s1505_s3 + $0x130] sm:$0xff] }
  0x38   : > { %1090 = vmatprep.subr.mxu0 %v438_v29  ;;  %1107 = vmatprep.subr.mxu1 %v932_v37 }
  0x39   : > { %1091 = vmatpush3.msra.mxu0 %v438_v29  ;;  %1108 = vmatpush3.msra.mxu1 %v932_v37  ;;  %v942_v29 = vld [vmem:[%s1505_s3 + $0x128] sm:$0xff] }
  0x3a   : > { %1092 = vmatprep.subr.mxu0 %v437_v30  ;;  %1109 = vmatprep.subr.mxu1 %v931_v41 }
  0x3b   : > { %1093 = vmatpush3.msra.mxu0 %v437_v30  ;;  %1110 = vmatpush3.msra.mxu1 %v931_v41  ;;  %v941_v30 = vld [vmem:[%s1505_s3 + $0x120] sm:$0xff] }
  0x3c   : > { %1094 = vmatprep.subr.mxu0 %v436_v31  ;;  %1111 = vmatprep.subr.mxu1 %v930_v42 }
  0x3d   : > { %1095 = vmatpush3.msra.mxu0 %v436_v31  ;;  %1112 = vmatpush3.msra.mxu1 %v930_v42  ;;  %v940_v31 = vld [vmem:[%s1505_s3 + $0x118] sm:$0xff]  ;;  %v953_v42 = vld [vmem:[%s1506_s4] ss:$0 sm:$0xff] }
  0x3e   : > { %1097 = vmatmul.mubr.msk.f32.vlgmr.msra.gmra.mxu0 %vm247_vm1, %v434_v32  ;;  %1134 = vmatprep.subr.mxu0 %v557_v38  ;;  %v939_v32 = vld [vmem:[%s1505_s3 + $0x110] sm:$0xff] }
  0x3f   : > { %1135 = vmatpush3.msra.mxu0 %v557_v38  ;;  %1113 = vmatprep.subr.mxu1 %v929_v44 }
  0x40   : > { %1136 = vmatprep.subr.mxu0 %v556_v39  ;;  %1114 = vmatpush3.msra.mxu1 %v929_v44 }
  0x41   : > { %1137 = vmatpush3.msra.mxu0 %v556_v39  ;;  %1115 = vmatprep.subr.mxu1 %v928_v46 }
  0x42   : > { %1138 = vmatprep.subr.mxu0 %v555_v40  ;;  %1116 = vmatpush3.msra.mxu1 %v928_v46 }
  0x43   : > { %1139 = vmatpush3.msra.mxu0 %v555_v40  ;;  %1117 = vmatprep.subr.mxu1 %v927_v48 }
  0x44   : > { %1140 = vmatprep.subr.mxu0 %v554_v43  ;;  %1118 = vmatpush3.msra.mxu1 %v927_v48 }
  0x45   : > { %1141 = vmatpush3.msra.mxu0 %v554_v43  ;;  %1119 = vmatprep.subr.mxu1 %v926_v50 }
  0x46   : > { %1142 = vmatprep.subr.mxu0 %v553_v45  ;;  %1120 = vmatpush3.msra.mxu1 %v926_v50 }
  0x47   : > { %1143 = vmatpush3.msra.mxu0 %v553_v45  ;;  %1121 = vmatprep.subr.mxu1 %v925_v51 }
  0x48   : > { %1144 = vmatprep.subr.mxu0 %v552_v47  ;;  %1122 = vmatpush3.msra.mxu1 %v925_v51 }
  0x49   : > { %1145 = vmatpush3.msra.mxu0 %v552_v47  ;;  %1123 = vmatprep.subr.mxu1 %v924_v53 }
  0x4a   : > { %1146 = vmatprep.subr.mxu0 %v551_v49  ;;  %1124 = vmatpush3.msra.mxu1 %v924_v53 }
  0x4b   : > { %1147 = vmatpush3.msra.mxu0 %v551_v49  ;;  %1125 = vmatprep.subr.mxu1 %v923_v55 }
  0x4c   : > { %1148 = vmatprep.subr.mxu0 %v550_v52  ;;  %1126 = vmatpush3.msra.mxu1 %v923_v55 }
  0x4d   : > { %1149 = vmatpush3.msra.mxu0 %v550_v52  ;;  %1127 = vmatprep.subr.mxu1 %v922_v57 }
  0x4e   : > { %1150 = vmatprep.subr.mxu0 %v549_v54  ;;  %1128 = vmatpush3.msra.mxu1 %v922_v57 }
  0x4f   : > { %1151 = vmatpush3.msra.mxu0 %v549_v54  ;;  %1129 = vmatprep.subr.mxu1 %v921_v59 }
  0x50   : > { %1152 = vmatprep.subr.mxu0 %v548_v56  ;;  %1130 = vmatpush3.msra.mxu1 %v921_v59 }
  0x51   : > { %1153 = vmatpush3.msra.mxu0 %v548_v56  ;;  %1169 = vmatprep.subr.mxu1 %v952_v61 }
  0x52   : > { %1154 = vmatprep.subr.mxu0 %v547_v58 }
  0x53   : > { %1155 = vmatpush3.msra.mxu0 %v547_v58 }
  0x54   : > { %1156 = vmatprep.subr.mxu0 %v546_v60 }
  0x55   : > { %1157 = vmatpush3.msra.mxu0 %v546_v60 }
  0x56   : > { %1158 = vmatprep.subr.mxu0 %v545_v62 }
  0x57   : > { %1159 = vmatpush3.msra.mxu0 %v545_v62 }
  0x58   : > { %1160 = vmatprep.subr.mxu0 %v544_v63 }
  0x59   : > { %1161 = vmatpush3.msra.mxu0 %v544_v63 }
  0x5a   : > { %1162 = vmatprep.subr.mxu0 %v543_v0 }
  0x5b   : > { %1163 = vmatpush3.msra.mxu0 %v543_v0 }
  0x5c   : > { %1164 = vmatprep.subr.mxu0 %v542_v1 }
  0x5d   : > { %1165 = vmatpush3.msra.mxu0 %v542_v1 }
  0xed   : > { %v1060_v2 = vpop.f32.mrf.mxu0 }
  0xee   : > { %v1079_v3 = vpop.f32.mrf.mxu1 }
  0xef   : > { %v343_v4 = vpop.f32.mrf.mxu0  ;;  %v430_v6 = vadd.f32 %v1079_v3, %v1060_v2 }
  0xf0   : > { %v424_v5 = vpop.f32.mrf.mxu1 }
  0xf1   : > { %v425_v9 = vadd.f32 %v424_v5, %v343_v4 }
  0xfe   : > { %v1098_v7 = vpop.f32.mrf.mxu0 }
  0xff   : > { %v526_v10 = vadd.f32 %v1098_v7, %v430_v6 }
 0x100   : > { %v516_v11 = vpop.f32.mrf.mxu0 }
 0x101   : > { %v535_v12 = vadd.f32 %v920_v8, %v526_v10  ;;  %v525_v13 = vadd.f32 %v516_v11, %v425_v9 }
 0x103   : > { %v537_v14 = vmax.f32 %v535_v12, 0.0  ;;  %v534_v15 = vadd.f32 %v920_v8, %v525_v13 }
 0x105   : > { %539 = vst [vmem:[#allocation3 + $0x9] sm:$0xff] %v537_v14  ;;  %v536_v16 = vmax.f32 %v534_v15, 0.0 }
 0x107   : > { %538 = vst [vmem:[#allocation3 + $0x1] sm:$0xff] %v536_v16  ;;  %1131 = vmatprep.mubr.f32.mxu1 %v536_v16 }
 0x108   : > { %1132 = vmatmul.mubr.f32.vlgmr.msra.gmra.mxu1 %v537_v14 }
 0x109   : > { %1170 = vmatpush3.msra.mxu1 %v952_v61 }
 0x10a   : > { %1171 = vmatprep.subr.mxu1 %v951_v17 }
 0x10b   : > { %1172 = vmatpush3.msra.mxu1 %v951_v17 }
 0x10c   : > { %1173 = vmatprep.subr.mxu1 %v950_v18  ;;  %v728_v35 = vld [vmem:[#allocation3 + $0xa] sm:$0xff] }
 0x10d   : > { %1174 = vmatpush3.msra.mxu1 %v950_v18 }
 0x10e   : > { %v540_v21 = vld [vmem:[#allocation3] sm:$0xff]  ;;  %v541_v22 = vld [vmem:[#allocation3 + $0x8] sm:$0xff]  ;;  %1175 = vmatprep.subr.mxu1 %v949_v19 }
 0x10f   : > { %v727_v23 = vld [vmem:[#allocation3 + $0x2] sm:$0xff]  ;;  %1166 = vmatprep.mubr.f32.mxu0 %v540_v21  ;;  %1176 = vmatpush3.msra.mxu1 %v949_v19 }
 0x110   : > { %1201 = vmatprep.mubr.f32.mxu1 %v727_v23  ;;  %1167 = vmatmul.mubr.f32.vlgmr.msra.gmra.mxu0 %v541_v22 }
 0x111   : > { %1177 = vmatprep.subr.mxu1 %v948_v20 }
 0x112   : > { %1178 = vmatpush3.msra.mxu1 %v948_v20 }
 0x113   : > { %1179 = vmatprep.subr.mxu1 %v947_v24 }
 0x114   : > { %1180 = vmatpush3.msra.mxu1 %v947_v24 }
 0x115   : > { %1181 = vmatprep.subr.mxu1 %v946_v25 }
 0x116   : > { %1182 = vmatpush3.msra.mxu1 %v946_v25 }
 0x117   : > { %1183 = vmatprep.subr.mxu1 %v945_v26 }
 0x118   : > { %1184 = vmatpush3.msra.mxu1 %v945_v26 }
 0x119   : > { %1185 = vmatprep.subr.mxu1 %v944_v27 }
 0x11a   : > { %1186 = vmatpush3.msra.mxu1 %v944_v27 }
 0x11b   : > { %1187 = vmatprep.subr.mxu1 %v943_v28 }
 0x11c   : > { %1188 = vmatpush3.msra.mxu1 %v943_v28 }
 0x11d   : > { %1189 = vmatprep.subr.mxu1 %v942_v29 }
 0x11e   : > { %1190 = vmatpush3.msra.mxu1 %v942_v29 }
 0x11f   : > { %1191 = vmatprep.subr.mxu1 %v941_v30 }
 0x120   : > { %1192 = vmatpush3.msra.mxu1 %v941_v30 }
 0x121   : > { %1193 = vmatprep.subr.mxu1 %v940_v31 }
 0x122   : > { %1194 = vmatpush3.msra.mxu1 %v940_v31 }
 0x123   : > { %1195 = vmatprep.subr.mxu1 %v939_v32 }
 0x124   : > { %1196 = vmatpush3.msra.mxu1 %v939_v32 }
 0x125   : > { %1197 = vmatprep.subr.mxu1 %v938_v33 }
 0x126   : > { %1198 = vmatpush3.msra.mxu1 %v938_v33 }
 0x127   : > { %1199 = vmatprep.subr.mxu1 %v937_v34 }
 0x128   : > { %1200 = vmatpush3.msra.mxu1 %v937_v34 }
 0x129   : > { %1202 = vmatmul.mubr.f32.vlgmr.msra.gmra.mxu1 %v728_v35 }
 0x1c8   : > { %v1133_v36 = vpop.f32.mrf.mxu1 }
 0x1ca   : > { %v643_v38 = vpop.f32.mrf.mxu1 }
 0x1d0   : > { %v1168_v37 = vpop.f32.mrf.mxu0 }
 0x1d1   : > { %v724_v40 = vadd.f32 %v1168_v37, %v1133_v36 }
 0x1d2   : > { %v718_v39 = vpop.f32.mrf.mxu0 }
 0x1d3   : > { %v719_v43 = vadd.f32 %v718_v39, %v643_v38 }
 0x1e9   : > { %v1203_v41 = vpop.f32.mrf.mxu1 }
 0x1ea   : > { %v822_v44 = vadd.f32 %v1203_v41, %v724_v40 }
 0x1eb   : > { %v812_v45 = vpop.f32.mrf.mxu1 }
 0x1ec   : > { %v831_v46 = vadd.f32 %v953_v42, %v822_v44  ;;  %v821_v47 = vadd.f32 %v812_v45, %v719_v43 }
 0x1ee   : > { %v833_v48 = vmax.f32 %v831_v46, 0.0  ;;  %v830_v49 = vadd.f32 %v953_v42, %v821_v47 }
 0x1f0   : > { %835 = vst [vmem:[%s239_s23 + $0x8] sm:$0xff] %v833_v48  ;;  %v832_v50 = vmax.f32 %v830_v49, 0.0 }
 0x1f2   : > { %834 = vst [vmem:[%s239_s23] sm:$0xff] %v832_v50 }
 0x1f3 PF: > { %s16_s18 = sadd.s32 1, %s1262_s18  }
 0x1f4   : > { %p13_p1 = scmp.ge.s32.totalorder %s16_s18, 4  }
 0x1f6   :  { %15 = sbr.rel (!%p13_p1) target bundleno = 1 (0x1), region = 79 }
 0x1fb   :  { %857 = vsyncpa [#allocation5], 1 }
 0x1fc   :  { %859 = vsyncpa [#allocation5 + $0x1], 1 }

</bundles_post_ra>
